<compile_context>
chip_gen: v5e
topology: v5e:2x2
jax: 0.10.0
libtpu: 0.0.40
codegen_flags: <defaults>
</compile_context>

<pallas_src>
import jax
import jax.numpy as jnp
from jax.experimental import pallas as pl
from jax.experimental.pallas import tpu as pltpu


def _vmem_capacity_bytes(default=64 * 1024 * 1024):
    """Best-effort physical VMEM size of the current TPU generation."""
    try:
        info = pltpu.get_tpu_info()
        cap = getattr(info, "vmem_capacity_bytes", None)
        if cap:
            return int(cap)
    except Exception:
        pass
    return default  # conservative (v7x per-TC VMEM)


def _make_non_local_kernel(bt, n_true):
    """Kernel for a block of `bt` batch elements, true spatial size N=n_true."""
    inv_n = 1.0 / float(n_true)

    def kernel(x_ref, pw_ref, pb_ref, a_ref, d_ref, o_ref):
        # x_ref : (Bt, C, N)  VMEM   input activations
        # pw_ref: (3, C)      VMEM   rows = [g_w, theta_w, phi_w]
        # pb_ref: (3,)        SMEM   [g_b, theta_b, phi_b] (scalars)
        # a_ref : (C, 1)      VMEM   folded (W conv + BN) scale
        # d_ref : (C, 1)      VMEM   folded (W conv + BN) shift
        # o_ref : (Bt, C, N)  VMEM   output
        pw = pw_ref[...]                      # (3, C)
        g_b = pb_ref[0]
        th_b = pb_ref[1]
        ph_b = pb_ref[2]
        a_col = a_ref[...]                    # (C, 1)
        d_col = d_ref[...]                    # (C, 1)

        # bt is capped at 8 -> bounded static unroll (keeps vreg pressure sane).
        for b in range(bt):
            xb = x_ref[b]                                               # (C, N)

            # g/theta/phi 1x1 convs == a (3, C) @ (C, N) channel reduction.
            # (MXU utilization is tiny at M=3, but the kernel is HBM-bound.)
            proj = jnp.dot(pw, xb, preferred_element_type=jnp.float32)  # (3, N)
            g_row = proj[0:1, :] + g_b                                  # (1, N)
            th_row = proj[1:2, :] + th_b                                # (1, N)
            ph_row = proj[2:3, :] + ph_b                                # (1, N)

            # Rank-1 collapse: y = (dot(phi, g) / N) * theta — no (N,N) matrix.
            s = jnp.sum(ph_row * g_row, axis=-1, keepdims=True) * inv_n  # (1, 1)
            y_row = s * th_row                                           # (1, N)

            # Folded W-conv (1->C) + eval-mode BatchNorm affine, then residual.
            o_ref[b] = (a_col * y_row + d_col + xb).astype(o_ref.dtype)

    return kernel


def non_local_forward(x, params, eps=1e-5, vmem_budget_bytes=None):
    """x: (B, C, H, W) float32 (NCHW, same as the PyTorch module)."""
    B, C, H, W = x.shape
    N = H * W

    # Free reshape (metadata only) — channels on sublanes, positions on lanes.
    x_flat = x.reshape(B, C, N).astype(jnp.float32)

    # Stacked 1x1-conv weights / biases for [g, theta, phi].
    pw = jnp.stack(
        [params["g_w"], params["theta_w"], params["phi_w"]], axis=0
    ).astype(jnp.float32)                                        # (3, C)
    pb = jnp.stack(
        [params["g_b"], params["theta_b"], params["phi_b"]]
    ).reshape(3).astype(jnp.float32)                             # (3,) -> SMEM

    # Fold W conv (1->C) and eval-mode BatchNorm into one per-channel affine.
    bn_scale = params["bn_gamma"] / jnp.sqrt(params["bn_var"] + eps)
    bn_shift = params["bn_beta"] - params["bn_mean"] * bn_scale
    a = (bn_scale * params["W_w"]).reshape(C, 1).astype(jnp.float32)          # (C, 1)
    d = (bn_scale * params["W_b"] + bn_shift).reshape(C, 1).astype(jnp.float32)

    # --- Generation-aware VMEM budget / bt (batch elements per grid step) ---
    vmem_cap = _vmem_capacity_bytes()
    if vmem_budget_bytes is None:
        # ~48 MiB on 128 MiB chips (v5e/v6e), 32 MiB on v7x (64 MiB VMEM).
        vmem_budget_bytes = min(vmem_cap // 2, 48 * 1024 * 1024)

    # Physical VMEM tile footprint of one batch element (sublane/lane padded).
    c_pad = ((C + 7) // 8) * 8
    n_lane = ((N + 127) // 128) * 128
    per_batch_bytes = c_pad * n_lane * 4

    # Double-buffered in + out blocks must fit the budget.
    bt_budget = max(1, vmem_budget_bytes // (4 * per_batch_bytes))
    # TODO(synk): if 4*per_batch_bytes > vmem_budget_bytes (huge C*N on v7x),
    # add an inner N-chunk pipeline with a two-pass `s` reduction instead of
    # relying on the bt=1 floor.

    # Keep the grid at >= ~4 steps (>= 2 for tiny B) so both v7x TCs get work
    # and the pipeline has something to overlap; cap the static unroll at 8.
    min_steps = min(B, 4)
    bt = int(max(1, min(bt_budget, 8, max(1, B // max(1, min_steps)))))

    grid = (pl.cdiv(B, bt),)   # ragged final block allowed (no divisibility req.)
    kernel = _make_non_local_kernel(bt, N)

    vmem_limit = int(min(vmem_cap - (8 << 20), vmem_budget_bytes + (8 << 20)))
    vmem_limit = max(vmem_limit, 16 << 20)

    out = pl.pallas_call(
        kernel,
        out_shape=jax.ShapeDtypeStruct((B, C, N), jnp.float32),
        grid=grid,
        in_specs=[
            # Last two block dims equal the full array dims -> (8,128) rule OK
            # for any C / N; no wrapper-side padding needed.
            pl.BlockSpec((bt, C, N), lambda i: (i, 0, 0)),
            pl.BlockSpec((3, C), lambda i: (0, 0)),
            pl.BlockSpec(memory_space=pltpu.MemorySpace.SMEM),   # biases (scalars)
            pl.BlockSpec((C, 1), lambda i: (0, 0)),
            pl.BlockSpec((C, 1), lambda i: (0, 0)),
        ],
        out_specs=pl.BlockSpec((bt, C, N), lambda i: (i, 0, 0)),
        compiler_params=pltpu.CompilerParams(
            dimension_semantics=("parallel",),
            vmem_limit_bytes=vmem_limit,
        ),
    )(x_flat, pw, pb, a, d)

    return out.reshape(B, C, H, W)


def non_local_ref(x, params, eps=1e-5):
    """Pure-JAX reference matching the PyTorch forward (eval-mode BN)."""
    B, C, H, W = x.shape
    N = H * W
    xf = x.reshape(B, C, N)
    g = jnp.einsum("c,bcn->bn", params["g_w"], xf) + params["g_b"]          # (B, N)
    th = jnp.einsum("c,bcn->bn", params["theta_w"], xf) + params["theta_b"]
    ph = jnp.einsum("c,bcn->bn", params["phi_w"], xf) + params["phi_b"]
    f = th[:, :, None] * ph[:, None, :]                                     # (B, N, N)
    y = jnp.matmul(f / N, g[:, :, None])[..., 0]                            # (B, N)
    wy = params["W_w"][None, :, None] * y[:, None, :] + params["W_b"][None, :, None]
    scale = params["bn_gamma"] / jnp.sqrt(params["bn_var"] + eps)
    shift = params["bn_beta"] - params["bn_mean"] * scale
    wy = wy * scale[None, :, None] + shift[None, :, None]
    return (wy + xf).reshape(B, C, H, W)


def init_params(key, in_channels):
    """Deterministic init following Non_local.__init__ shapes (inter_channels=1)."""
    C = in_channels
    ks = jax.random.split(key, 8)

    def conv_init(k, shape, fan_in):
        bound = 1.0 / (fan_in ** 0.5)
        return jax.random.uniform(k, shape, jnp.float32, -bound, bound)

    return dict(
        # g / theta / phi: Conv2d(C, 1, 1) -> weight (C,), bias scalar
        g_w=conv_init(ks[0], (C,), C), g_b=conv_init(ks[1], (), C),
        theta_w=conv_init(ks[2], (C,), C), theta_b=conv_init(ks[3], (), C),
        phi_w=conv_init(ks[4], (C,), C), phi_b=conv_init(ks[5], (), C),
        # W[0]: Conv2d(1, C, 1) -> weight (C,), bias (C,)
        W_w=conv_init(ks[6], (C,), 1), W_b=conv_init(ks[7], (C,), 1),
        # W[1]: BatchNorm2d(C) with weight=0, bias=0 (per nn.init.constant_)
        bn_gamma=jnp.zeros((C,), jnp.float32),
        bn_beta=jnp.zeros((C,), jnp.float32),
        bn_mean=jnp.zeros((C,), jnp.float32),
        bn_var=jnp.ones((C,), jnp.float32),
    )


if __name__ == "__main__":
    key = jax.random.PRNGKey(0)
    k_x, k_p, k_x2, k_bn1, k_bn2, k_x3 = jax.random.split(key, 6)

    # --- Test 1: module as initialized (zero-init BN -> exact identity) -----
    B, C, H, W = 2, 4, 16, 16
    x = jax.random.normal(k_x, (B, C, H, W), jnp.float32)
    params = init_params(k_p, C)

    z = jax.block_until_ready(non_local_forward(x, params))
    z_ref = non_local_ref(x, params)
    assert z.shape == (B, C, H, W)
    assert jnp.allclose(z, z_ref, atol=1e-4, rtol=1e-4), "mismatch vs JAX reference"
    assert jnp.allclose(z, x, atol=1e-5), "zero-init BN should make the block an identity"

    # --- Test 2: non-trivial BN/affine path (validates the full math) -------
    params2 = dict(params)
    params2["bn_gamma"] = jnp.ones((C,), jnp.float32)
    params2["bn_beta"] = 0.1 * jnp.arange(C, dtype=jnp.float32)
    params2["bn_mean"] = 0.05 * jax.random.normal(k_bn1, (C,), jnp.float32)
    params2["bn_var"] = jnp.abs(jax.random.normal(k_bn2, (C,), jnp.float32)) + 0.5

    z2 = jax.block_until_ready(non_local_forward(x, params2))
    z2_ref = non_local_ref(x, params2)
    assert jnp.allclose(z2, z2_ref, atol=1e-4, rtol=1e-4), "mismatch (non-trivial BN)"

    # --- Test 3: N = H*W not a multiple of 128 (no pad pass, masked tail) ---
    H3, W3 = 10, 10
    x3 = jax.random.normal(k_x2, (B, C, H3, W3), jnp.float32)
    z3 = jax.block_until_ready(non_local_forward(x3, params2))
    z3_ref = non_local_ref(x3, params2)
    assert jnp.allclose(z3, z3_ref, atol=1e-4, rtol=1e-4), "mismatch (non-128 N)"

    # --- Test 4: ragged batch grid (B not a multiple of bt) ------------------
    B4 = 9
    x4 = jax.random.normal(k_x3, (B4, C, H3, W3), jnp.float32)
    z4 = jax.block_until_ready(non_local_forward(x4, params2))
    z4_ref = non_local_ref(x4, params2)
    assert jnp.allclose(z4, z4_ref, atol=1e-4, rtol=1e-4), "mismatch (ragged batch)"

    print("KERNEL_OK")
</pallas_src>

<mosaic_0001>
module attributes {stable_mosaic.version = 11 : i64} {
  func.func @kernel(%arg0: i32, %arg1: memref<1x4x256xf32, #tpu.memory_space<vmem>>, %arg2: memref<3x4xf32, #tpu.memory_space<vmem>>, %arg3: memref<3xf32, #tpu.memory_space<smem>>, %arg4: memref<4x1xf32, #tpu.memory_space<vmem>>, %arg5: memref<4x1xf32, #tpu.memory_space<vmem>>, %arg6: memref<1x4x256xf32, #tpu.memory_space<vmem>>) attributes {dimension_semantics = [#tpu.dimension_semantics<parallel>], iteration_bounds = array<i64: 2>, scalar_prefetch = 0 : i64, scratch_operands = 0 : i64, tpu.core_type = #tpu.core_type<tc>, window_params = [{transform_indices = @transform_0, window_bounds = array<i64: 1, 4, 256>}, {pipeline_mode = #tpu.pipeline_mode<synchronous>, transform_indices = @transform_1, window_bounds = array<i64: 3, 4>}, {transform_indices = @transform_2, window_bounds = array<i64: 3>}, {pipeline_mode = #tpu.pipeline_mode<synchronous>, transform_indices = @transform_3, window_bounds = array<i64: 4, 1>}, {pipeline_mode = #tpu.pipeline_mode<synchronous>, transform_indices = @transform_4, window_bounds = array<i64: 4, 1>}, {transform_indices = @transform_5, window_bounds = array<i64: 1, 4, 256>}]} {
    %c0 = arith.constant 0 : index
    %c0_0 = arith.constant 0 : index
    %0 = vector.load %arg2[%c0, %c0_0] : memref<3x4xf32, #tpu.memory_space<vmem>>, vector<3x4xf32>
    %c0_1 = arith.constant 0 : index
    %1 = memref.load %arg3[%c0_1] : memref<3xf32, #tpu.memory_space<smem>>
    %c1 = arith.constant 1 : index
    %2 = memref.load %arg3[%c1] : memref<3xf32, #tpu.memory_space<smem>>
    %c2 = arith.constant 2 : index
    %3 = memref.load %arg3[%c2] : memref<3xf32, #tpu.memory_space<smem>>
    %c0_2 = arith.constant 0 : index
    %c0_3 = arith.constant 0 : index
    %4 = vector.load %arg4[%c0_2, %c0_3] : memref<4x1xf32, #tpu.memory_space<vmem>>, vector<4x1xf32>
    %c0_4 = arith.constant 0 : index
    %c0_5 = arith.constant 0 : index
    %5 = vector.load %arg5[%c0_4, %c0_5] : memref<4x1xf32, #tpu.memory_space<vmem>>, vector<4x1xf32>
    %c0_6 = arith.constant 0 : index
    %c0_7 = arith.constant 0 : index
    %c0_8 = arith.constant 0 : index
    %6 = vector.load %arg1[%c0_6, %c0_7, %c0_8] : memref<1x4x256xf32, #tpu.memory_space<vmem>>, vector<1x4x256xf32>
    %7 = vector.shape_cast %6 : vector<1x4x256xf32> to vector<4x256xf32>
    %cst = arith.constant dense<0.000000e+00> : vector<3x256xf32>
    %8 = tpu.matmul %0, %7, %cst {dimension_numbers = #tpu.dot_dimension_numbers<[1], [0], [0], [1], [0, 0, 1, 1], [], []>} : vector<3x4xf32>, vector<4x256xf32>, vector<3x256xf32> -> vector<3x256xf32>
    %9 = vector.extract_strided_slice %8 {offsets = [0, 0], sizes = [1, 256], strides = [1, 1]} : vector<3x256xf32> to vector<1x256xf32>
    %10 = vector.broadcast %1 : f32 to vector<1x256xf32>
    %11 = arith.addf %9, %10 : vector<1x256xf32>
    %12 = vector.extract_strided_slice %8 {offsets = [1, 0], sizes = [1, 256], strides = [1, 1]} : vector<3x256xf32> to vector<1x256xf32>
    %13 = vector.broadcast %2 : f32 to vector<1x256xf32>
    %14 = arith.addf %12, %13 : vector<1x256xf32>
    %15 = vector.extract_strided_slice %8 {offsets = [2, 0], sizes = [1, 256], strides = [1, 1]} : vector<3x256xf32> to vector<1x256xf32>
    %16 = vector.broadcast %3 : f32 to vector<1x256xf32>
    %17 = arith.addf %15, %16 : vector<1x256xf32>
    %18 = arith.mulf %17, %11 : vector<1x256xf32>
    %cst_9 = arith.constant dense<0.000000e+00> : vector<1xf32>
    %19 = vector.multi_reduction <add>, %18, %cst_9 [1] : vector<1x256xf32> to vector<1xf32>
    %20 = vector.shape_cast %19 : vector<1xf32> to vector<1x1xf32>
    %cst_10 = arith.constant 3.906250e-03 : f32
    %21 = vector.broadcast %cst_10 : f32 to vector<1x1xf32>
    %22 = arith.mulf %20, %21 : vector<1x1xf32>
    %23 = vector.broadcast %22 : vector<1x1xf32> to vector<1x256xf32>
    %24 = arith.mulf %23, %14 : vector<1x256xf32>
    %25 = vector.broadcast %4 : vector<4x1xf32> to vector<4x256xf32>
    %26 = vector.broadcast %24 : vector<1x256xf32> to vector<4x256xf32>
    %27 = arith.mulf %25, %26 : vector<4x256xf32>
    %28 = vector.broadcast %5 : vector<4x1xf32> to vector<4x256xf32>
    %29 = arith.addf %27, %28 : vector<4x256xf32>
    %30 = arith.addf %29, %7 : vector<4x256xf32>
    %c0_11 = arith.constant 0 : index
    %c0_12 = arith.constant 0 : index
    %c0_13 = arith.constant 0 : index
    %31 = vector.load %arg6[%c0_11, %c0_12, %c0_13] : memref<1x4x256xf32, #tpu.memory_space<vmem>>, vector<1x4x256xf32>
    %32 = vector.shape_cast %31 : vector<1x4x256xf32> to vector<4x256xf32>
    %33 = vector.shape_cast %30 : vector<4x256xf32> to vector<1x4x256xf32>
    tpu.vector_store %arg6[%c0_11, %c0_12, %c0_13], %33 {strides = array<i32>} : memref<1x4x256xf32, #tpu.memory_space<vmem>>, vector<1x4x256xf32>,
    return
  }
  func.func @transform_0(%arg0: i32) -> (i32, i32, i32) {
    %c0_i32 = arith.constant 0 : i32
    %c0_i32_0 = arith.constant 0 : i32
    %c0_i32_1 = arith.constant 0 : i32
    return %arg0, %c0_i32, %c0_i32_0 : i32, i32, i32
  }
  func.func @transform_1(%arg0: i32) -> (i32, i32) {
    %c0_i32 = arith.constant 0 : i32
    %c0_i32_0 = arith.constant 0 : i32
    %c0_i32_1 = arith.constant 0 : i32
    return %c0_i32, %c0_i32_0 : i32, i32
  }
  func.func @transform_2(%arg0: i32) -> i32 {
    %c0_i32 = arith.constant 0 : i32
    %c0_i32_0 = arith.constant 0 : i32
    return %c0_i32 : i32
  }
  func.func @transform_3(%arg0: i32) -> (i32, i32) {
    %c0_i32 = arith.constant 0 : i32
    %c0_i32_0 = arith.constant 0 : i32
    %c0_i32_1 = arith.constant 0 : i32
    return %c0_i32, %c0_i32_0 : i32, i32
  }
  func.func @transform_4(%arg0: i32) -> (i32, i32) {
    %c0_i32 = arith.constant 0 : i32
    %c0_i32_0 = arith.constant 0 : i32
    %c0_i32_1 = arith.constant 0 : i32
    return %c0_i32, %c0_i32_0 : i32, i32
  }
  func.func @transform_5(%arg0: i32) -> (i32, i32, i32) {
    %c0_i32 = arith.constant 0 : i32
    %c0_i32_0 = arith.constant 0 : i32
    %c0_i32_1 = arith.constant 0 : i32
    return %arg0, %c0_i32, %c0_i32_0 : i32, i32, i32
  }
}

</mosaic_0001>

<bundles_post_ra>
// kernel: tpu_custom_call.1
= control target key start
LH: loop header
LB: loop body
LE: loop exit
PB: predicated region body
PF: predicated region fallthrough
CT: control target
= control target key end

     0   :  { %10 = vsyncpa [#allocation3], 0  ;;  %s864_s0 = inlined_call_operand.hbm [shape: f32[2,4,256], index: 0, kind: input, shape index: {}]   ;;  %s865_s1 = inlined_call_operand.vmem [shape: f32[3,4], index: 1, kind: input, shape index: {}]   ;;  %s866_s2 = inlined_call_operand.vmem [shape: f32[3], index: 2, kind: input, shape index: {}]   ;;  %s867_s3 = inlined_call_operand.vmem [shape: f32[4,1], index: 3, kind: input, shape index: {}]   ;;  %s868_s4 = inlined_call_operand.vmem [shape: f32[4,1], index: 4, kind: input, shape index: {}]   ;;  %s869_s5 = inlined_call_operand.hbm [shape: f32[2,4,256], index: 5, kind: output, shape index: {}]  }
   0x1   :  { %12 = vsyncpa [#allocation3 + $0x1], 0 }
   0x2   :  { %13 = vsyncpa [#allocation5], 0 }
   0x3   :  { %14 = vsyncpa [#allocation4], 0 }
   0x4   :  { %16 = vsyncpa [#allocation4 + $0x1], 0  ;;  %s710_s18 = smov 0   ;;  %s712_s19 = smov 0  }
   0x5   :  { %s714_s20 = smov 0   ;;  %s716_s21 = smov 0  }
   0x6 LB: > { %s731_s22 = sadd.s32 4294967295, %s676_s21   ;;  %s477_s23 = sadd.s32 4294967294, %s676_s21   ;;  %s676_s21 = sphi %s716_s21, %s879_s21   ;;  %s672_s20 = sphi %s714_s20, %s878_s20   ;;  %s668_s19 = sphi %s712_s19, %s877_s19   ;;  %s664_s18 = sphi %s710_s18, %s876_s18  }
   0x7   : > { %p42_p0 = scmp.ne.s32.totalorder %s668_s19, %s664_s18  ;;  %p43_p1 = scmp.eq.s32.totalorder %s731_s22, 0 }
   0x8   : > { %p150_p2 = scmp.eq.s32.totalorder %s731_s22, 1  ;;  %p156_p3 = scmp.eq.s32.totalorder %s477_s23, 1 }
   0x9   : > { %p740_p4 = por %p43_p1, %p42_p0  ;;  %p478_p5 = scmp.ge.s32.totalorder %s676_s21, 1 }
   0xa   : > { %p745_p6 = por %p156_p3, %p42_p0  ;;  %p163_p7 = scmp.lt.s32.totalorder %s676_s21, 3 }
   0xb   : > { %s178_s28 = sshll.u32 %s866_s2, 4  ;;  %s761_s30 = sadd.s32 1, %s676_s21   ;;  %s179_s28 = int_to_ptr.vmem [resolvable:$true] %s178_s28 }
   0xc   : > { %p753_p8 = pnand %p478_p5, %p163_p7  ;;  %s26_s6 = ssub.s32 %s676_s21, %s761_s30 }
   0xd   : > { %p27_p12 = scmp.eq.s32.totalorder %s26_s6, 0  ;;  %s29_s7 = sadd.s32 1, %s672_s20 }
   0xe   : > { %p509_p10 = pneg %p753_p8  ;;  %p36_p13 = scmp.ne.s32.totalorder %s672_s20, %s668_s19 }
   0xf   : > { %s678_s8 = smov [#allocation6]   ;;  %p37_p0 = scmp.eq.s32.totalorder %s676_s21, 0 }
  0x10   : > { %p510_p11 = pnand %p509_p10, %p43_p1  ;;  %p776_p3 = por %p150_p2, %p36_p13 }
  0x11   : > { %s771_s9 = scalar_select %p27_p12, %s672_s20, %s29_s7  }
  0x12   : > { %512 = dma.vmem_to_smem (!%p510_p11), %s179_s28, 16, %s678_s8, [#allocation5]  }
  0x13   : > { %s195_s11 = sand.u32 1, %s672_s20   ;;  %p38_p5 = por %p37_p0, %p36_p13 }
  0x14   : > { %p522_p7 = scmp.lt.s32.totalorder %s676_s21, 2  ;;  %s481_s12 = sshll.u32 %s195_s11, 3 }
  0x15   : > { %s499_s13 = sshll.u32 %s676_s21, 3  ;;  %s199_s23 = scalar_lea.vmem [#allocation2], %s481_s12 }
  0x16   : > { %s204_s16 = scalar_lea.hbm %s864_s0, %s499_s13  ;;  %s208_s26 = sshll.u32 %s199_s23, 4  ;;  %s209_s26 = int_to_ptr.vmem [resolvable:$true] %s208_s26 }
  0x17   : > { %s206_s17 = sshll.u32 %s204_s16, 4  ;;  %p786_p10 = pnand %p522_p7, %p38_p5  ;;  %s207_s17 = int_to_ptr.hbm [resolvable:$true] %s206_s17 }
  0x18   : > { %s196_s28 = scalar_lea.sflag [#allocation3], %s195_s11  ;;  %s576_s6 = sshra.s32 %s207_s17, 4  ;;  %s577_s6 = int_to_ptr.hbm [resolvable:$true] %s576_s6 }
  0x19   : > { %s578_s7 = scalar_lea.hbm %s577_s6, 8  ;;  %p580_p11 = pneg %p786_p10 }
  0x1a   : > { %p579_p2 = scmp.ne.s32.totalorder %s577_s6, %s578_s7  ;;  %s583_s12 = scalar_lea.hbm %s864_s0, 16 }
  0x1b   : > { %p584_p0 = scmp.lt.s32.totalorder %s577_s6, %s864_s0  ;;  %p585_p5 = scmp.lt.s32.totalorder %s583_s12, %s578_s7 }
  0x1c   : > { %p581_p12 = pnand %p580_p11, %p579_p2 }
  0x1d   : > { %p586_p7 = por %p585_p5, %p584_p0 }
  0x1e   : > { %p582_p13 = pneg %p581_p12 }
  0x20   : > { %p587_p9 = pnand %p586_p7, %p582_p13 }
  0x22   : > { %590 = shalt.err (!%p587_p9)
}
  0x23   : > { %516 = dma.hbm_to_vmem [thread:$0]  (!%p786_p10), %s207_s17, 128, %s209_s26, %s196_s28  }
  0x24   : > { %217 = sbr.rel (%p753_p8) target bundleno = 338 (0x152), region = 40  ;;  %s803_s11 = sand.u32 (!%p753_p8), 1, %s668_s19  }
  0x25   : > { %s485_s16 = sshll.u32 (!%p753_p8), %s803_s11, 3  ;;  %s220_s23 = scalar_lea.sflag (!%p753_p8), [#allocation3], %s803_s11 }
  0x26   : > { %s223_s6 = scalar_lea.vmem (!%p753_p8), [#allocation2], %s485_s16 }
  0x29   : > { %651 = dma.done.wait (%p740_p4), %s220_s23, 128  }
  0x2a   : > { %653 = vsyncadd (%p740_p4), %s220_s23, 4294967168 }
  0x2b   : > { %655 = dma.done.wait (%p43_p1), [#allocation5], 16  }
  0x2c   : > { %657 = vsyncadd (%p43_p1), [#allocation5], 4294967280 }
  0x2d   : > { %234 = sfence }
  0x2e   : > { %v263_v0 = vld [vmem:[%s223_s6] sm:$0xff]  ;;  %vm272_vm0 = vcmask 1043456   ;;  %v257_v1 = vld [vmem:[%s865_s1] sm:$0x7]  ;;  %vm268_vm1 = vcmask 31744   ;;  %v679_v4 = vmov 0  }
  0x2f   : > { %265 = vst [vmem:[#allocation1] ss:$2 sm:$0xff] %v263_v0  ;;  %559 = vset.pattern.permute.xlu0 %v679_v4  ;;  %560 = vset.pattern.permute.xlu1 %v679_v4  ;;  %s258_s24 = sld [smem:[#allocation6]]  ;;  %v262_v6 = vld [vmem:[%s868_s4] sm:$0xf]  ;;  %vm334_vm2 = vcmask 1042434  }
  0x30   : > { %s489_s26 = sld [smem:[#allocation6 + $0x2]]  ;;  %360 = vperm.xlu1 %560, %v262_v6   ;;  %v261_v21 = vld [vmem:[%s867_s3] sm:$0xf]  ;;  %s500_s12 = sshll.u32 %s731_s22, 3 }
  0x31   : > { %s488_s13 = sld [smem:[#allocation6 + $0x1]]  ;;  %s390_s23 = scalar_lea.hbm %s869_s5, %s500_s12 }
  0x32   : > { %s256_s6 = scalar_lea.vmem [#allocation7], %s485_s16  ;;  %s394_s17 = sshll.u32 %s390_s23, 4  ;;  %s395_s17 = int_to_ptr.hbm [resolvable:$true] %s394_s17 }
  0x33   : > { %s392_s29 = sshll.u32 %s256_s6, 4  ;;  %s379_s22 = scalar_lea.sflag [#allocation4], %s803_s11  ;;  %s393_s29 = int_to_ptr.vmem [resolvable:$true] %s392_s29 }
  0x34   : > { %s626_s16 = scalar_lea.hbm %s869_s5, 16 }
  0x35   : > { %v317_v5 = vstv %s258_s24  ;;  %s620_s24 = sshra.s32 %s395_s17, 4  ;;  %s621_s24 = int_to_ptr.hbm [resolvable:$true] %s620_s24 }
  0x36   : > { %v266_v2 = vld.sshfl [vmem:[#allocation1] sm:$0xff pattern:$0x75316420]  ;;  %v267_v3 = vld.sshfl [vmem:[#allocation1 + $0x8] sm:$0xff pattern:$0x75316420]  ;;  %v323_v8 = vstv %s489_s26  ;;  %p627_p9 = scmp.lt.s32.totalorder %s621_s24, %s869_s5 }
  0x37   : > { %490 = vmatpush.msk.msra.mxu0 %vm272_vm0, %v266_v2  ;;  %492 = vmatpush.msk.msra.mxu1 %vm272_vm0, %v267_v3  ;;  %365 = vst [vmem:[#allocation1] ss:$2 sm:$0xff] %v263_v0  ;;  %v320_v22 = vstv %s488_s13  ;;  %s622_s26 = scalar_lea.hbm %s621_s24, 8 }
  0x38   : > { %491 = vmatmul.msk.f32.vlgmr.msra.gmra.mxu0 %vm268_vm1, %v257_v1  ;;  %493 = vmatmul.msk.f32.vlgmr.msra.gmra.mxu1 %vm268_vm1, %v257_v1  ;;  %p623_p1 = scmp.ne.s32.totalorder %s621_s24, %s622_s26  ;;  %p628_p10 = scmp.lt.s32.totalorder %s626_s16, %s622_s26 }
  0x3a   : > { %p624_p4 = pnand %p623_p1, %p776_p3  ;;  %p629_p2 = por %p628_p10, %p627_p9 }
  0x3c   : > { %p625_p8 = pneg %p624_p4 }
  0x3e   : > { %v367_v37 = vld.sshfl [vmem:[#allocation1 + $0x8] sm:$0xff pattern:$0x75316420]  ;;  %v366_v40 = vld.sshfl [vmem:[#allocation1] sm:$0xff pattern:$0x75316420]  ;;  %p630_p11 = pnand %p629_p2, %p625_p8 }
  0xa2   : > { %v361_v34 = vpop.permute.xlu1 %360 }
  0xb5   : > { %v294_v7 = vpop.f32.mrf.mxu0  ;;  %v314_v9 = vpop.f32.mrf.mxu1 }
  0xb6   : > { %v318_v10 = vadd.f32 %v317_v5, %v294_v7  ;;  %v319_v11 = vadd.f32 %v317_v5, %v314_v9  ;;  %v324_v12 = vadd.f32 %v323_v8, %v294_v7  ;;  %v325_v14 = vadd.f32 %v323_v8, %v314_v9 }
  0xb7   : > { %v321_v24 = vadd.f32 %v320_v22, %v294_v7  ;;  %v322_v25 = vadd.f32 %v320_v22, %v314_v9 }
  0xb8   : > { %v328_v13 = vrot.slane %v318_v10, 6  ;;  %v329_v15 = vrot.slane %v319_v11, 6 }
  0xb9   : > { %v343_v27 = vrot.slane %v321_v24, 7  ;;  %v344_v28 = vrot.slane %v322_v25, 7 }
  0xba   : > { %v332_v16 = vmul.f32 %v328_v13, %v324_v12  ;;  %v333_v17 = vmul.f32 %v329_v15, %v325_v14 }
  0xbc   : > { %v335_v18 = vsel %vm334_vm2, %v332_v16, 0.0  ;;  %v336_v19 = vsel %vm334_vm2, %v333_v17, 0.0 }
  0xbd   : > { %v337_v20 = vadd.f32 %v336_v19, %v335_v18 }
  0xbf   : > { %338 = vadd.xlane.f32.xlu0 %v337_v20 }
  0xd3   : > { %351 = vperm.xlu0 %559, %v261_v21  }
 0x132   : > { %v339_v23 = vpop.xlane.xlu0 %338 }
 0x133   : > { %v340_v26 = vmul.f32 0.00390625, %v339_v23 }
 0x135   : > { %v347_v29 = vmul.f32 %v343_v27, %v340_v26  ;;  %v348_v30 = vmul.f32 %v344_v28, %v340_v26 }
 0x137   : > { %v354_v31 = vperm.slane %v347_v29, 2  ;;  %v355_v32 = vperm.slane %v348_v30, 2 }
 0x145   : > { %v352_v33 = vpop.permute.xlu0 %351 }
 0x146   : > { %v356_v35 = vmul.f32 %v354_v31, %v352_v33  ;;  %v357_v36 = vmul.f32 %v355_v32, %v352_v33 }
 0x148   : > { %v363_v38 = vadd.f32 %v361_v34, %v356_v35  ;;  %v364_v39 = vadd.f32 %v361_v34, %v357_v36 }
 0x14a   : > { %v371_v41 = vadd.f32 %v367_v37, %v364_v39  ;;  %v370_v42 = vadd.f32 %v366_v40, %v363_v38 }
 0x14c   : > { %v374_v43 = vrot.slane %v371_v41, 4 }
 0x14e   : > { %v375_v44 = vsel %vm272_vm0, %v370_v42, %v374_v43 }
 0x14f   : > { %377 = vst [vmem:[%s256_s6] sm:$0xff] %v375_v44 }
 0x150   : > { %633 = shalt.err (!%p630_p11)
}
 0x151   : > { %507 = dma.vmem_to_hbm [thread:$0]  (%p776_p3), %s393_s29, 128, %s395_s17, %s379_s22  }
 0x152 PF: > { %s406_s11 = sand.u32 1, %s664_s18   ;;  %p875_p12 = scmp.ge.s32.totalorder %s676_s21, 2 }
 0x153   : > { %s407_s13 = scalar_lea.sflag [#allocation4], %s406_s11 }
 0x154   : > { %p518_p13 = pnand %p875_p12, %p745_p6 }
 0x156   : > { %p519_p0 = pneg %p518_p13 }
 0x158   : > { %659 = dma.done.wait (%p519_p0), %s407_s13, 128  }
 0x159   : > { %661 = vsyncadd (%p519_p0), %s407_s13, 4294967168  ;;  %p19_p5 = scmp.ge.s32.totalorder %s761_s30, 4   ;;  %s876_s18 = smov %s668_s19 }
 0x15a   : > { %s877_s19 = smov %s672_s20  ;;  %s878_s20 = smov %s771_s9 }
 0x15b   : > { %s879_s21 = smov %s761_s30  ;;  %21 = sbr.rel (!%p19_p5) target bundleno = 6 (0x6), region = 90 }
 0x160   :  { %413 = vsyncpa [#allocation3], 1 }
 0x161   :  { %415 = vsyncpa [#allocation3 + $0x1], 1 }
 0x162   :  { %416 = vsyncpa [#allocation4], 1 }
 0x163   :  { %418 = vsyncpa [#allocation4 + $0x1], 1 }
 0x164   :  { %419 = vsyncpa [#allocation5], 1 }
 0x165   :  { %421 = vsyncpa [#allocation5 + $0x1], 1 }

</bundles_post_ra>
